<compile_context>
chip_gen: v6e
topology: v6e:2x2x1
jax: 0.10.0
libtpu: 0.0.40
codegen_flags: <defaults>
</compile_context>

<pallas_src>
import math
from functools import partial

import jax
import jax.numpy as jnp
from jax.experimental import pallas as pl
from jax.experimental.pallas import tpu as pltpu

# ---------------- synthetic BERT config (small) ----------------
VOCAB = 100
TYPE_VOCAB = 2
MAX_POS = 64
HIDDEN = 32          # bert.config.hidden_size
N_HEADS = 2
D_HEAD = HIDDEN // N_HEADS
FFN = 64
N_LAYERS = 2
NUM_CLASS = 4        # num_class for W_hy (defined in __init__, unused by forward)
LN_EPS = 1e-12
ATTN_SCALE = 1.0 / math.sqrt(D_HEAD)
GEMM_DTYPE = jnp.bfloat16   # MXU inputs; accumulation stays f32


# ---------------- in-kernel helpers (f32 elementwise) ----------------
def _layernorm(x, g, b):
    mu = jnp.mean(x, axis=-1, keepdims=True)
    var = jnp.mean(jnp.square(x - mu), axis=-1, keepdims=True)
    return (x - mu) * jax.lax.rsqrt(var + LN_EPS) * g + b


def _gelu(y):
    # TODO(synk): HF BERT default 'gelu' is erf-based; tanh approximation used
    # here (EUP-native tanh, ~1e-3 deviation).
    return 0.5 * y * (1.0 + jnp.tanh(0.7978845608028654 * (y + 0.044715 * y * y * y)))


def _dot(a, b):
    # bf16 MXU inputs, f32 accumulate.
    return jnp.dot(a.astype(GEMM_DTYPE), b.astype(GEMM_DTYPE),
                   preferred_element_type=jnp.float32)


# ---------------- fused encoder kernel ----------------
def _encoder_kernel(emb_ref, mask_ref, embln_ref, gemm_ref, wf_ref, small_ref,
                    o_ref, ctx_scr, *, b_blk, seq):
    H, F, DH, NH = HIDDEN, FFN, D_HEAD, N_HEADS
    l = pl.program_id(1)
    m_blk = b_blk * seq

    # Layer 0: fused embedding LayerNorm.  The activation lives in o_ref's VMEM
    # block (output block index constant over the layer axis -> VMEM-resident,
    # single HBM writeback after the last layer / row-block switch).
    @pl.when(l == 0)
    def _():
        o_ref[...] = _layernorm(emb_ref[...], embln_ref[0:1, :], embln_ref[1:2, :])

    x = o_ref[...]                                            # [m_blk, H] f32

    # ---- unpack this layer's weights (slabs were DMA'd once for the whole grid) ----
    gw = gemm_ref[l]                                          # [H, 3H+H+F] bf16
    wqkv = gw[:, :3 * H]          # head-major [q0|k0|v0|q1|k1|v1], scale folded into q
    wo = gw[:, 3 * H:4 * H]
    wi = gw[:, 4 * H:]
    wf = wf_ref[l]                                            # [F, H] bf16
    sp = small_ref[l]                                         # [8, 128] f32
    bqkv = sp[0:1, :3 * H]
    bo = sp[1:2, :H]
    bi = sp[2:3, :F]
    bf_b = sp[3:4, :H]
    ln1g, ln1b = sp[4:5, :H], sp[5:6, :H]
    ln2g, ln2b = sp[6:7, :H], sp[7:8, :H]

    # ---- fused QKV projection: single GEMM with N = 3*H ----
    qkv = _dot(x, wqkv) + bqkv                                # [m_blk, 3H] f32
    qkv3 = qkv.reshape(b_blk, seq, 3 * H)                     # leading-dim split only
    mask3 = mask_ref[...]                                     # [b_blk, 1, S] additive

    # ---- self-attention: matmuls batched over the batch dim, static 2-head loop ----
    for h in range(NH):                                       # tiny static unroll
        c0 = h * 3 * DH
        q = qkv3[:, :, c0:c0 + DH]                            # [b, S, dh]
        k = qkv3[:, :, c0 + DH:c0 + 2 * DH]
        v = qkv3[:, :, c0 + 2 * DH:c0 + 3 * DH]
        s = jax.lax.dot_general(q.astype(GEMM_DTYPE), k.astype(GEMM_DTYPE),
                                (((2,), (2,)), ((0,), (0,))),
                                preferred_element_type=jnp.float32)   # [b, S, S]
        s = s + mask3
        s = s - jnp.max(s, axis=-1, keepdims=True)
        p = jnp.exp(s)
        p = p * pl.reciprocal(jnp.sum(p, axis=-1, keepdims=True), approx=True)
        ctx_h = jax.lax.dot_general(p.astype(GEMM_DTYPE), v.astype(GEMM_DTYPE),
                                    (((2,), (1,)), ((0,), (0,))),
                                    preferred_element_type=jnp.float32)  # [b, S, dh]
        ctx_scr[:, h * DH:(h + 1) * DH] = ctx_h.reshape(m_blk, DH)

    ctx = ctx_scr[...]                                        # [m_blk, H]

    # ---- attention output projection + residual + LN ----
    attn_out = _dot(ctx, wo) + bo
    x = _layernorm(attn_out + x, ln1g, ln1b)

    # ---- FFN (GELU) + residual + LN ----
    ff = _gelu(_dot(x, wi) + bi)
    ff = _dot(ff, wf) + bf_b
    x = _layernorm(ff + x, ln2g, ln2b)

    o_ref[...] = x                                            # stays in VMEM


def bert_encoder_fused(params, emb_flat, mask_add, batch, seq):
    M, H, F, L = batch * seq, HIDDEN, FFN, N_LAYERS
    # Split the batch into row blocks so the "parallel" axis can use both
    # TensorCores on v7x (pure serialization overhead elsewhere is negligible).
    n_row_blocks = 2 if (batch >= 2 and batch % 2 == 0) else 1
    b_blk = batch // n_row_blocks
    m_blk = b_blk * seq

    row2 = lambda shape: pl.BlockSpec(shape, lambda c, l: (c, 0))
    row3 = lambda shape: pl.BlockSpec(shape, lambda c, l: (c, 0, 0))
    const2 = lambda shape: pl.BlockSpec(shape, lambda c, l: (0, 0))
    const3 = lambda shape: pl.BlockSpec(shape, lambda c, l: (0, 0, 0))

    return pl.pallas_call(
        partial(_encoder_kernel, b_blk=b_blk, seq=seq),
        out_shape=jax.ShapeDtypeStruct((M, H), jnp.float32),
        grid=(n_row_blocks, N_LAYERS),
        in_specs=[
            row2((m_blk, H)),                   # emb (post-gather, pre-LN)
            row3((b_blk, 1, seq)),              # additive attention mask
            const2((2, H)),                     # emb LN gamma/beta
            const3((L, H, 3 * H + H + F)),      # bf16 GEMM slab: [wqkv | wo | wi]
            const3((L, F, H)),                  # bf16 wf
            const3((L, 8, 128)),                # f32 biases + LN params slab
        ],
        out_specs=row2((m_blk, H)),             # constant over layer axis -> resident
        scratch_shapes=[pltpu.VMEM((m_blk, H), jnp.float32)],   # per-head ctx assembly
        compiler_params=pltpu.CompilerParams(
            dimension_semantics=("parallel", "arbitrary"),
            vmem_limit_bytes=32 * 1024 * 1024),
    )(emb_flat, mask_add, params["emb_ln"],
      params["gemm_slab"], params["wf_slab"], params["small_slab"])


# ---------------- parameters (deterministic synthetic init) ----------------
def init_params(key):
    keys = iter(jax.random.split(key, 64))

    def dense(shape):
        return 0.02 * jax.random.normal(next(keys), shape, jnp.float32)

    H, F, L, DH, NH = HIDDEN, FFN, N_LAYERS, D_HEAD, N_HEADS

    # Attention projections; 1/sqrt(d_head) folded into Q weight+bias at init.
    wq = dense((L, H, H)) * ATTN_SCALE
    wk = dense((L, H, H))
    wv = dense((L, H, H))
    bq = jnp.zeros((L, H), jnp.float32) * ATTN_SCALE
    bk = jnp.zeros((L, H), jnp.float32)
    bv = jnp.zeros((L, H), jnp.float32)

    # Head-major column packing: [q_h | k_h | v_h] contiguous per head.
    wqkv_hm = jnp.concatenate(
        [jnp.concatenate([wq[:, :, h * DH:(h + 1) * DH],
                          wk[:, :, h * DH:(h + 1) * DH],
                          wv[:, :, h * DH:(h + 1) * DH]], axis=-1)
         for h in range(NH)], axis=-1)                                  # [L, H, 3H]
    bqkv_hm = jnp.concatenate(
        [jnp.concatenate([bq[:, h * DH:(h + 1) * DH],
                          bk[:, h * DH:(h + 1) * DH],
                          bv[:, h * DH:(h + 1) * DH]], axis=-1)
         for h in range(NH)], axis=-1)                                  # [L, 3H]

    wo = dense((L, H, H))
    bo = jnp.zeros((L, H), jnp.float32)
    wi = dense((L, H, F))
    bi = jnp.zeros((L, F), jnp.float32)
    wf = dense((L, F, H))
    bf = jnp.zeros((L, H), jnp.float32)
    ln1_g = jnp.ones((L, H), jnp.float32)
    ln1_b = jnp.zeros((L, H), jnp.float32)
    ln2_g = jnp.ones((L, H), jnp.float32)
    ln2_b = jnp.zeros((L, H), jnp.float32)

    # bf16 GEMM weight slab: columns [wqkv (3H) | wo (H) | wi (F)] -> [L, H, 192]
    gemm_slab = jnp.concatenate([wqkv_hm, wo, wi], axis=-1).astype(GEMM_DTYPE)
    wf_slab = wf.astype(GEMM_DTYPE)                                      # [L, F, H]

    # f32 small-params slab [L, 8, 128]: one row per param group, lane offset 0.
    small = jnp.zeros((L, 8, 128), jnp.float32)
    small = small.at[:, 0, :3 * H].set(bqkv_hm)
    small = small.at[:, 1, :H].set(bo)
    small = small.at[:, 2, :F].set(bi)
    small = small.at[:, 3, :H].set(bf)
    small = small.at[:, 4, :H].set(ln1_g)
    small = small.at[:, 5, :H].set(ln1_b)
    small = small.at[:, 6, :H].set(ln2_g)
    small = small.at[:, 7, :H].set(ln2_b)

    params = {
        "word_emb": dense((VOCAB, H)),
        "pos_emb": dense((MAX_POS, H)),
        "type_emb": dense((TYPE_VOCAB, H)),
        "emb_ln": jnp.stack([jnp.ones((H,), jnp.float32),
                             jnp.zeros((H,), jnp.float32)], axis=0),     # [2, H]
        # W_hy from emoClassifer.__init__ (only used by predict(), not forward()):
        "W_hy_w": dense((H, NUM_CLASS)),
        "W_hy_b": jnp.zeros((NUM_CLASS,), jnp.float32),
        "gemm_slab": gemm_slab,
        "wf_slab": wf_slab,
        "small_slab": small,
    }
    return params


# ---------------- forward (matches emoClassifer.forward) ----------------
def emo_classifier_forward(params, X):
    """Returns H_all = bert(input_ids, token_type_ids, attention_mask)[0]."""
    input_ids = X[:, 0]
    token_type_ids = X[:, 1]
    attention_mask = X[:, 2]
    B, S = input_ids.shape

    # Embedding lookups (gathers) stay in plain-JAX glue.
    emb = (params["word_emb"][input_ids]
           + params["pos_emb"][:S][None, :, :]
           + params["type_emb"][token_type_ids])                 # [B, S, H]
    emb_flat = emb.reshape(B * S, HIDDEN).astype(jnp.float32)

    # Additive attention mask computed once (1 = attend, 0 = pad).
    mask_add = ((1.0 - attention_mask.astype(jnp.float32)) * (-10000.0)
                ).reshape(B, 1, S)                               # [B, 1, S]

    h = bert_encoder_fused(params, emb_flat, mask_add, B, S)     # [B*S, H]
    return h.reshape(B, S, HIDDEN)


if __name__ == "__main__":
    key = jax.random.PRNGKey(0)
    pkey, ikey = jax.random.split(key)
    params = init_params(pkey)

    B, S = 2, 8
    input_ids = jax.random.randint(ikey, (B, S), 0, VOCAB, dtype=jnp.int32)
    token_type_ids = jnp.zeros((B, S), jnp.int32)
    attention_mask = jnp.ones((B, S), jnp.int32)
    X = jnp.stack([input_ids, token_type_ids, attention_mask], axis=1)   # [B, 3, S]

    H_all = jax.jit(emo_classifier_forward)(params, X)
    jax.block_until_ready(H_all)
    assert H_all.shape == (B, S, HIDDEN) and H_all.dtype == jnp.float32
    assert bool(jnp.all(jnp.isfinite(H_all)))
    print("KERNEL_OK")
</pallas_src>

<mosaic_0001>
module attributes {stable_mosaic.version = 11 : i64} {
  func.func @_encoder_kernel(%arg0: i32, %arg1: i32, %arg2: memref<8x32xf32, #tpu.memory_space<vmem>>, %arg3: memref<1x1x8xf32, #tpu.memory_space<vmem>>, %arg4: memref<2x32xf32, #tpu.memory_space<vmem>>, %arg5: memref<2x32x192xbf16, #tpu.memory_space<vmem>>, %arg6: memref<2x64x32xbf16, #tpu.memory_space<vmem>>, %arg7: memref<2x8x128xf32, #tpu.memory_space<vmem>>, %arg8: memref<8x32xf32, #tpu.memory_space<vmem>>, %arg9: memref<8x32xf32, #tpu.memory_space<vmem>>) attributes {dimension_semantics = [#tpu.dimension_semantics<parallel>, #tpu.dimension_semantics<arbitrary>], iteration_bounds = array<i64: 2, 2>, scalar_prefetch = 0 : i64, scratch_operands = 1 : i64, tpu.core_type = #tpu.core_type<tc>, window_params = [{transform_indices = @transform_0, window_bounds = array<i64: 8, 32>}, {transform_indices = @transform_1, window_bounds = array<i64: 1, 1, 8>}, {pipeline_mode = #tpu.pipeline_mode<synchronous>, transform_indices = @transform_2, window_bounds = array<i64: 2, 32>}, {pipeline_mode = #tpu.pipeline_mode<synchronous>, transform_indices = @transform_3, window_bounds = array<i64: 2, 32, 192>}, {pipeline_mode = #tpu.pipeline_mode<synchronous>, transform_indices = @transform_4, window_bounds = array<i64: 2, 64, 32>}, {pipeline_mode = #tpu.pipeline_mode<synchronous>, transform_indices = @transform_5, window_bounds = array<i64: 2, 8, 128>}, {transform_indices = @transform_6, window_bounds = array<i64: 8, 32>}]} {
    %c0_i32 = arith.constant 0 : i32
    %0 = arith.cmpi eq, %arg1, %c0_i32 : i32
    %1 = arith.extui %0 : i1 to i32
    %c0_i32_0 = arith.constant 0 : i32
    %2 = arith.cmpi ne, %1, %c0_i32_0 : i32
    scf.if %2 {
      %c0_43 = arith.constant 0 : index
      %c0_44 = arith.constant 0 : index
      %149 = vector.load %arg2[%c0_43, %c0_44] : memref<8x32xf32, #tpu.memory_space<vmem>>, vector<8x32xf32>
      %c0_45 = arith.constant 0 : index
      %c0_46 = arith.constant 0 : index
      %150 = vector.load %arg4[%c0_45, %c0_46] : memref<2x32xf32, #tpu.memory_space<vmem>>, vector<1x32xf32>
      %c1 = arith.constant 1 : index
      %c0_47 = arith.constant 0 : index
      %151 = vector.load %arg4[%c1, %c0_47] : memref<2x32xf32, #tpu.memory_space<vmem>>, vector<1x32xf32>
      %cst_48 = arith.constant dense<0.000000e+00> : vector<8xf32>
      %152 = vector.multi_reduction <add>, %149, %cst_48 [1] : vector<8x32xf32> to vector<8xf32>
      %153 = vector.shape_cast %152 : vector<8xf32> to vector<8x1xf32>
      %cst_49 = arith.constant 3.200000e+01 : f32
      %154 = vector.broadcast %cst_49 : f32 to vector<8x1xf32>
      %155 = arith.divf %153, %154 : vector<8x1xf32>
      %156 = vector.broadcast %155 : vector<8x1xf32> to vector<8x32xf32>
      %157 = arith.subf %149, %156 : vector<8x32xf32>
      %158 = arith.mulf %157, %157 : vector<8x32xf32>
      %cst_50 = arith.constant dense<0.000000e+00> : vector<8xf32>
      %159 = vector.multi_reduction <add>, %158, %cst_50 [1] : vector<8x32xf32> to vector<8xf32>
      %160 = vector.shape_cast %159 : vector<8xf32> to vector<8x1xf32>
      %cst_51 = arith.constant 3.200000e+01 : f32
      %161 = vector.broadcast %cst_51 : f32 to vector<8x1xf32>
      %162 = arith.divf %160, %161 : vector<8x1xf32>
      %163 = vector.broadcast %155 : vector<8x1xf32> to vector<8x32xf32>
      %164 = arith.subf %149, %163 : vector<8x32xf32>
      %cst_52 = arith.constant 9.99999996E-13 : f32
      %165 = vector.broadcast %cst_52 : f32 to vector<8x1xf32>
      %166 = arith.addf %162, %165 : vector<8x1xf32>
      %167 = math.rsqrt %166 : vector<8x1xf32>
      %168 = vector.broadcast %167 : vector<8x1xf32> to vector<8x32xf32>
      %169 = arith.mulf %164, %168 : vector<8x32xf32>
      %170 = vector.broadcast %150 : vector<1x32xf32> to vector<8x32xf32>
      %171 = arith.mulf %169, %170 : vector<8x32xf32>
      %172 = vector.broadcast %151 : vector<1x32xf32> to vector<8x32xf32>
      %173 = arith.addf %171, %172 : vector<8x32xf32>
      %c0_53 = arith.constant 0 : index
      %c0_54 = arith.constant 0 : index
      %174 = vector.load %arg8[%c0_53, %c0_54] : memref<8x32xf32, #tpu.memory_space<vmem>>, vector<8x32xf32>
      tpu.vector_store %arg8[%c0_53, %c0_54], %173 {strides = array<i32>} : memref<8x32xf32, #tpu.memory_space<vmem>>, vector<8x32xf32>,
    } else {
    }
    %c0 = arith.constant 0 : index
    %c0_1 = arith.constant 0 : index
    %3 = vector.load %arg8[%c0, %c0_1] : memref<8x32xf32, #tpu.memory_space<vmem>>, vector<8x32xf32>
    %4 = arith.index_cast %arg1 : i32 to index
    %c0_2 = arith.constant 0 : index
    %c0_3 = arith.constant 0 : index
    %5 = vector.load %arg5[%4, %c0_2, %c0_3] : memref<2x32x192xbf16, #tpu.memory_space<vmem>>, vector<1x32x192xbf16>
    %6 = vector.shape_cast %5 : vector<1x32x192xbf16> to vector<32x192xbf16>
    %7 = vector.extract_strided_slice %6 {offsets = [0, 0], sizes = [32, 96], strides = [1, 1]} : vector<32x192xbf16> to vector<32x96xbf16>
    %8 = vector.extract_strided_slice %6 {offsets = [0, 96], sizes = [32, 32], strides = [1, 1]} : vector<32x192xbf16> to vector<32x32xbf16>
    %9 = vector.extract_strided_slice %6 {offsets = [0, 128], sizes = [32, 64], strides = [1, 1]} : vector<32x192xbf16> to vector<32x64xbf16>
    %10 = arith.index_cast %arg1 : i32 to index
    %c0_4 = arith.constant 0 : index
    %c0_5 = arith.constant 0 : index
    %11 = vector.load %arg6[%10, %c0_4, %c0_5] : memref<2x64x32xbf16, #tpu.memory_space<vmem>>, vector<1x64x32xbf16>
    %12 = vector.shape_cast %11 : vector<1x64x32xbf16> to vector<64x32xbf16>
    %13 = arith.index_cast %arg1 : i32 to index
    %c0_6 = arith.constant 0 : index
    %c0_7 = arith.constant 0 : index
    %14 = vector.load %arg7[%13, %c0_6, %c0_7] : memref<2x8x128xf32, #tpu.memory_space<vmem>>, vector<1x8x128xf32>
    %15 = vector.shape_cast %14 : vector<1x8x128xf32> to vector<8x128xf32>
    %16 = vector.extract_strided_slice %15 {offsets = [0, 0], sizes = [1, 96], strides = [1, 1]} : vector<8x128xf32> to vector<1x96xf32>
    %17 = vector.extract_strided_slice %15 {offsets = [1, 0], sizes = [1, 32], strides = [1, 1]} : vector<8x128xf32> to vector<1x32xf32>
    %18 = vector.extract_strided_slice %15 {offsets = [2, 0], sizes = [1, 64], strides = [1, 1]} : vector<8x128xf32> to vector<1x64xf32>
    %19 = vector.extract_strided_slice %15 {offsets = [3, 0], sizes = [1, 32], strides = [1, 1]} : vector<8x128xf32> to vector<1x32xf32>
    %20 = vector.extract_strided_slice %15 {offsets = [4, 0], sizes = [1, 32], strides = [1, 1]} : vector<8x128xf32> to vector<1x32xf32>
    %21 = vector.extract_strided_slice %15 {offsets = [5, 0], sizes = [1, 32], strides = [1, 1]} : vector<8x128xf32> to vector<1x32xf32>
    %22 = vector.extract_strided_slice %15 {offsets = [6, 0], sizes = [1, 32], strides = [1, 1]} : vector<8x128xf32> to vector<1x32xf32>
    %23 = vector.extract_strided_slice %15 {offsets = [7, 0], sizes = [1, 32], strides = [1, 1]} : vector<8x128xf32> to vector<1x32xf32>
    %24 = arith.truncf %3 : vector<8x32xf32> to vector<8x32xbf16>
    %cst = arith.constant dense<0.000000e+00> : vector<8x96xf32>
    %25 = tpu.matmul %24, %7, %cst {dimension_numbers = #tpu.dot_dimension_numbers<[1], [0], [0], [1], [0, 0, 1, 1], [], []>} : vector<8x32xbf16>, vector<32x96xbf16>, vector<8x96xf32> -> vector<8x96xf32>
    %26 = vector.broadcast %16 : vector<1x96xf32> to vector<8x96xf32>
    %27 = arith.addf %25, %26 : vector<8x96xf32>
    %28 = vector.shape_cast %27 : vector<8x96xf32> to vector<1x8x96xf32>
    %c0_8 = arith.constant 0 : index
    %c0_9 = arith.constant 0 : index
    %c0_10 = arith.constant 0 : index
    %29 = vector.load %arg3[%c0_8, %c0_9, %c0_10] : memref<1x1x8xf32, #tpu.memory_space<vmem>>, vector<1x1x8xf32>
    %30 = vector.extract_strided_slice %28 {offsets = [0, 0, 0], sizes = [1, 8, 16], strides = [1, 1, 1]} : vector<1x8x96xf32> to vector<1x8x16xf32>
    %31 = vector.extract_strided_slice %28 {offsets = [0, 0, 16], sizes = [1, 8, 16], strides = [1, 1, 1]} : vector<1x8x96xf32> to vector<1x8x16xf32>
    %32 = vector.extract_strided_slice %28 {offsets = [0, 0, 32], sizes = [1, 8, 16], strides = [1, 1, 1]} : vector<1x8x96xf32> to vector<1x8x16xf32>
    %33 = arith.truncf %30 : vector<1x8x16xf32> to vector<1x8x16xbf16>
    %34 = arith.truncf %31 : vector<1x8x16xf32> to vector<1x8x16xbf16>
    %cst_11 = arith.constant dense<0.000000e+00> : vector<1x8x8xf32>
    %35 = tpu.matmul %33, %34, %cst_11 {dimension_numbers = #tpu.dot_dimension_numbers<[2], [2], [1], [1], [0, 0, 0, 1, 1, 1], [0], [0]>} : vector<1x8x16xbf16>, vector<1x8x16xbf16>, vector<1x8x8xf32> -> vector<1x8x8xf32>
    %36 = vector.broadcast %29 : vector<1x1x8xf32> to vector<1x8x8xf32>
    %37 = arith.addf %35, %36 : vector<1x8x8xf32>
    %cst_12 = arith.constant dense<0xFF800000> : vector<1x8xf32>
    %38 = vector.multi_reduction <maximumf>, %37, %cst_12 [2] : vector<1x8x8xf32> to vector<1x8xf32>
    %39 = vector.shape_cast %38 : vector<1x8xf32> to vector<1x8x1xf32>
    %40 = vector.broadcast %39 : vector<1x8x1xf32> to vector<1x8x8xf32>
    %41 = arith.subf %37, %40 : vector<1x8x8xf32>
    %42 = math.exp %41 : vector<1x8x8xf32>
    %cst_13 = arith.constant dense<0.000000e+00> : vector<1x8xf32>
    %43 = vector.multi_reduction <add>, %42, %cst_13 [2] : vector<1x8x8xf32> to vector<1x8xf32>
    %44 = vector.shape_cast %43 : vector<1x8xf32> to vector<1x8x1xf32>
    %45 = tpu.reciprocal %44 {approx = true} : vector<1x8x1xf32> -> vector<1x8x1xf32>
    %46 = vector.broadcast %45 : vector<1x8x1xf32> to vector<1x8x8xf32>
    %47 = arith.mulf %42, %46 : vector<1x8x8xf32>
    %48 = arith.truncf %47 : vector<1x8x8xf32> to vector<1x8x8xbf16>
    %49 = arith.truncf %32 : vector<1x8x16xf32> to vector<1x8x16xbf16>
    %cst_14 = arith.constant dense<0.000000e+00> : vector<1x8x16xf32>
    %50 = tpu.matmul %48, %49, %cst_14 {dimension_numbers = #tpu.dot_dimension_numbers<[2], [1], [1], [2], [0, 0, 0, 1, 1, 2], [0], [0]>} : vector<1x8x8xbf16>, vector<1x8x16xbf16>, vector<1x8x16xf32> -> vector<1x8x16xf32>
    %51 = vector.shape_cast %50 : vector<1x8x16xf32> to vector<8x16xf32>
    %c0_15 = arith.constant 0 : index
    %c0_16 = arith.constant 0 : index
    %52 = vector.load %arg9[%c0_15, %c0_16] : memref<8x32xf32, #tpu.memory_space<vmem>>, vector<8x16xf32>
    tpu.vector_store %arg9[%c0_15, %c0_16], %51 {strides = array<i32>} : memref<8x32xf32, #tpu.memory_space<vmem>>, vector<8x16xf32>,
    %53 = vector.extract_strided_slice %28 {offsets = [0, 0, 48], sizes = [1, 8, 16], strides = [1, 1, 1]} : vector<1x8x96xf32> to vector<1x8x16xf32>
    %54 = vector.extract_strided_slice %28 {offsets = [0, 0, 64], sizes = [1, 8, 16], strides = [1, 1, 1]} : vector<1x8x96xf32> to vector<1x8x16xf32>
    %55 = vector.extract_strided_slice %28 {offsets = [0, 0, 80], sizes = [1, 8, 16], strides = [1, 1, 1]} : vector<1x8x96xf32> to vector<1x8x16xf32>
    %56 = arith.truncf %53 : vector<1x8x16xf32> to vector<1x8x16xbf16>
    %57 = arith.truncf %54 : vector<1x8x16xf32> to vector<1x8x16xbf16>
    %cst_17 = arith.constant dense<0.000000e+00> : vector<1x8x8xf32>
    %58 = tpu.matmul %56, %57, %cst_17 {dimension_numbers = #tpu.dot_dimension_numbers<[2], [2], [1], [1], [0, 0, 0, 1, 1, 1], [0], [0]>} : vector<1x8x16xbf16>, vector<1x8x16xbf16>, vector<1x8x8xf32> -> vector<1x8x8xf32>
    %59 = vector.broadcast %29 : vector<1x1x8xf32> to vector<1x8x8xf32>
    %60 = arith.addf %58, %59 : vector<1x8x8xf32>
    %cst_18 = arith.constant dense<0xFF800000> : vector<1x8xf32>
    %61 = vector.multi_reduction <maximumf>, %60, %cst_18 [2] : vector<1x8x8xf32> to vector<1x8xf32>
    %62 = vector.shape_cast %61 : vector<1x8xf32> to vector<1x8x1xf32>
    %63 = vector.broadcast %62 : vector<1x8x1xf32> to vector<1x8x8xf32>
    %64 = arith.subf %60, %63 : vector<1x8x8xf32>
    %65 = math.exp %64 : vector<1x8x8xf32>
    %cst_19 = arith.constant dense<0.000000e+00> : vector<1x8xf32>
    %66 = vector.multi_reduction <add>, %65, %cst_19 [2] : vector<1x8x8xf32> to vector<1x8xf32>
    %67 = vector.shape_cast %66 : vector<1x8xf32> to vector<1x8x1xf32>
    %68 = tpu.reciprocal %67 {approx = true} : vector<1x8x1xf32> -> vector<1x8x1xf32>
    %69 = vector.broadcast %68 : vector<1x8x1xf32> to vector<1x8x8xf32>
    %70 = arith.mulf %65, %69 : vector<1x8x8xf32>
    %71 = arith.truncf %70 : vector<1x8x8xf32> to vector<1x8x8xbf16>
    %72 = arith.truncf %55 : vector<1x8x16xf32> to vector<1x8x16xbf16>
    %cst_20 = arith.constant dense<0.000000e+00> : vector<1x8x16xf32>
    %73 = tpu.matmul %71, %72, %cst_20 {dimension_numbers = #tpu.dot_dimension_numbers<[2], [1], [1], [2], [0, 0, 0, 1, 1, 2], [0], [0]>} : vector<1x8x8xbf16>, vector<1x8x16xbf16>, vector<1x8x16xf32> -> vector<1x8x16xf32>
    %74 = vector.shape_cast %73 : vector<1x8x16xf32> to vector<8x16xf32>
    %c0_21 = arith.constant 0 : index
    %c16 = arith.constant 16 : index
    %75 = vector.load %arg9[%c0_21, %c16] : memref<8x32xf32, #tpu.memory_space<vmem>>, vector<8x16xf32>
    tpu.vector_store %arg9[%c0_21, %c16], %74 {strides = array<i32>} : memref<8x32xf32, #tpu.memory_space<vmem>>, vector<8x16xf32>,
    %c0_22 = arith.constant 0 : index
    %c0_23 = arith.constant 0 : index
    %76 = vector.load %arg9[%c0_22, %c0_23] : memref<8x32xf32, #tpu.memory_space<vmem>>, vector<8x32xf32>
    %77 = arith.truncf %76 : vector<8x32xf32> to vector<8x32xbf16>
    %cst_24 = arith.constant dense<0.000000e+00> : vector<8x32xf32>
    %78 = tpu.matmul %77, %8, %cst_24 {dimension_numbers = #tpu.dot_dimension_numbers<[1], [0], [0], [1], [0, 0, 1, 1], [], []>} : vector<8x32xbf16>, vector<32x32xbf16>, vector<8x32xf32> -> vector<8x32xf32>
    %79 = vector.broadcast %17 : vector<1x32xf32> to vector<8x32xf32>
    %80 = arith.addf %78, %79 : vector<8x32xf32>
    %81 = arith.addf %80, %3 : vector<8x32xf32>
    %cst_25 = arith.constant dense<0.000000e+00> : vector<8xf32>
    %82 = vector.multi_reduction <add>, %81, %cst_25 [1] : vector<8x32xf32> to vector<8xf32>
    %83 = vector.shape_cast %82 : vector<8xf32> to vector<8x1xf32>
    %cst_26 = arith.constant 3.200000e+01 : f32
    %84 = vector.broadcast %cst_26 : f32 to vector<8x1xf32>
    %85 = arith.divf %83, %84 : vector<8x1xf32>
    %86 = vector.broadcast %85 : vector<8x1xf32> to vector<8x32xf32>
    %87 = arith.subf %81, %86 : vector<8x32xf32>
    %88 = arith.mulf %87, %87 : vector<8x32xf32>
    %cst_27 = arith.constant dense<0.000000e+00> : vector<8xf32>
    %89 = vector.multi_reduction <add>, %88, %cst_27 [1] : vector<8x32xf32> to vector<8xf32>
    %90 = vector.shape_cast %89 : vector<8xf32> to vector<8x1xf32>
    %cst_28 = arith.constant 3.200000e+01 : f32
    %91 = vector.broadcast %cst_28 : f32 to vector<8x1xf32>
    %92 = arith.divf %90, %91 : vector<8x1xf32>
    %93 = vector.broadcast %85 : vector<8x1xf32> to vector<8x32xf32>
    %94 = arith.subf %81, %93 : vector<8x32xf32>
    %cst_29 = arith.constant 9.99999996E-13 : f32
    %95 = vector.broadcast %cst_29 : f32 to vector<8x1xf32>
    %96 = arith.addf %92, %95 : vector<8x1xf32>
    %97 = math.rsqrt %96 : vector<8x1xf32>
    %98 = vector.broadcast %97 : vector<8x1xf32> to vector<8x32xf32>
    %99 = arith.mulf %94, %98 : vector<8x32xf32>
    %100 = vector.broadcast %20 : vector<1x32xf32> to vector<8x32xf32>
    %101 = arith.mulf %99, %100 : vector<8x32xf32>
    %102 = vector.broadcast %21 : vector<1x32xf32> to vector<8x32xf32>
    %103 = arith.addf %101, %102 : vector<8x32xf32>
    %104 = arith.truncf %103 : vector<8x32xf32> to vector<8x32xbf16>
    %cst_30 = arith.constant dense<0.000000e+00> : vector<8x64xf32>
    %105 = tpu.matmul %104, %9, %cst_30 {dimension_numbers = #tpu.dot_dimension_numbers<[1], [0], [0], [1], [0, 0, 1, 1], [], []>} : vector<8x32xbf16>, vector<32x64xbf16>, vector<8x64xf32> -> vector<8x64xf32>
    %106 = vector.broadcast %18 : vector<1x64xf32> to vector<8x64xf32>
    %107 = arith.addf %105, %106 : vector<8x64xf32>
    %cst_31 = arith.constant 5.000000e-01 : f32
    %108 = vector.broadcast %cst_31 : f32 to vector<8x64xf32>
    %109 = arith.mulf %108, %107 : vector<8x64xf32>
    %cst_32 = arith.constant 4.471500e-02 : f32
    %110 = vector.broadcast %cst_32 : f32 to vector<8x64xf32>
    %111 = arith.mulf %110, %107 : vector<8x64xf32>
    %112 = arith.mulf %111, %107 : vector<8x64xf32>
    %113 = arith.mulf %112, %107 : vector<8x64xf32>
    %114 = arith.addf %107, %113 : vector<8x64xf32>
    %cst_33 = arith.constant 0.797884583 : f32
    %115 = vector.broadcast %cst_33 : f32 to vector<8x64xf32>
    %116 = arith.mulf %115, %114 : vector<8x64xf32>
    %117 = math.tanh %116 : vector<8x64xf32>
    %cst_34 = arith.constant 1.000000e+00 : f32
    %118 = vector.broadcast %cst_34 : f32 to vector<8x64xf32>
    %119 = arith.addf %118, %117 : vector<8x64xf32>
    %120 = arith.mulf %109, %119 : vector<8x64xf32>
    %121 = arith.truncf %120 : vector<8x64xf32> to vector<8x64xbf16>
    %cst_35 = arith.constant dense<0.000000e+00> : vector<8x32xf32>
    %122 = tpu.matmul %121, %12, %cst_35 {dimension_numbers = #tpu.dot_dimension_numbers<[1], [0], [0], [1], [0, 0, 1, 1], [], []>} : vector<8x64xbf16>, vector<64x32xbf16>, vector<8x32xf32> -> vector<8x32xf32>
    %123 = vector.broadcast %19 : vector<1x32xf32> to vector<8x32xf32>
    %124 = arith.addf %122, %123 : vector<8x32xf32>
    %125 = arith.addf %124, %103 : vector<8x32xf32>
    %cst_36 = arith.constant dense<0.000000e+00> : vector<8xf32>
    %126 = vector.multi_reduction <add>, %125, %cst_36 [1] : vector<8x32xf32> to vector<8xf32>
    %127 = vector.shape_cast %126 : vector<8xf32> to vector<8x1xf32>
    %cst_37 = arith.constant 3.200000e+01 : f32
    %128 = vector.broadcast %cst_37 : f32 to vector<8x1xf32>
    %129 = arith.divf %127, %128 : vector<8x1xf32>
    %130 = vector.broadcast %129 : vector<8x1xf32> to vector<8x32xf32>
    %131 = arith.subf %125, %130 : vector<8x32xf32>
    %132 = arith.mulf %131, %131 : vector<8x32xf32>
    %cst_38 = arith.constant dense<0.000000e+00> : vector<8xf32>
    %133 = vector.multi_reduction <add>, %132, %cst_38 [1] : vector<8x32xf32> to vector<8xf32>
    %134 = vector.shape_cast %133 : vector<8xf32> to vector<8x1xf32>
    %cst_39 = arith.constant 3.200000e+01 : f32
    %135 = vector.broadcast %cst_39 : f32 to vector<8x1xf32>
    %136 = arith.divf %134, %135 : vector<8x1xf32>
    %137 = vector.broadcast %129 : vector<8x1xf32> to vector<8x32xf32>
    %138 = arith.subf %125, %137 : vector<8x32xf32>
    %cst_40 = arith.constant 9.99999996E-13 : f32
    %139 = vector.broadcast %cst_40 : f32 to vector<8x1xf32>
    %140 = arith.addf %136, %139 : vector<8x1xf32>
    %141 = math.rsqrt %140 : vector<8x1xf32>
    %142 = vector.broadcast %141 : vector<8x1xf32> to vector<8x32xf32>
    %143 = arith.mulf %138, %142 : vector<8x32xf32>
    %144 = vector.broadcast %22 : vector<1x32xf32> to vector<8x32xf32>
    %145 = arith.mulf %143, %144 : vector<8x32xf32>
    %146 = vector.broadcast %23 : vector<1x32xf32> to vector<8x32xf32>
    %147 = arith.addf %145, %146 : vector<8x32xf32>
    %c0_41 = arith.constant 0 : index
    %c0_42 = arith.constant 0 : index
    %148 = vector.load %arg8[%c0_41, %c0_42] : memref<8x32xf32, #tpu.memory_space<vmem>>, vector<8x32xf32>
    tpu.vector_store %arg8[%c0_41, %c0_42], %147 {strides = array<i32>} : memref<8x32xf32, #tpu.memory_space<vmem>>, vector<8x32xf32>,
    return
  }
  func.func @transform_0(%arg0: i32, %arg1: i32) -> (i32, i32) {
    %c0_i32 = arith.constant 0 : i32
    %c0_i32_0 = arith.constant 0 : i32
    return %arg0, %c0_i32 : i32, i32
  }
  func.func @transform_1(%arg0: i32, %arg1: i32) -> (i32, i32, i32) {
    %c0_i32 = arith.constant 0 : i32
    %c0_i32_0 = arith.constant 0 : i32
    %c0_i32_1 = arith.constant 0 : i32
    return %arg0, %c0_i32, %c0_i32_0 : i32, i32, i32
  }
  func.func @transform_2(%arg0: i32, %arg1: i32) -> (i32, i32) {
    %c0_i32 = arith.constant 0 : i32
    %c0_i32_0 = arith.constant 0 : i32
    %c0_i32_1 = arith.constant 0 : i32
    return %c0_i32, %c0_i32_0 : i32, i32
  }
  func.func @transform_3(%arg0: i32, %arg1: i32) -> (i32, i32, i32) {
    %c0_i32 = arith.constant 0 : i32
    %c0_i32_0 = arith.constant 0 : i32
    %c0_i32_1 = arith.constant 0 : i32
    %c0_i32_2 = arith.constant 0 : i32
    return %c0_i32, %c0_i32_0, %c0_i32_1 : i32, i32, i32
  }
  func.func @transform_4(%arg0: i32, %arg1: i32) -> (i32, i32, i32) {
    %c0_i32 = arith.constant 0 : i32
    %c0_i32_0 = arith.constant 0 : i32
    %c0_i32_1 = arith.constant 0 : i32
    %c0_i32_2 = arith.constant 0 : i32
    return %c0_i32, %c0_i32_0, %c0_i32_1 : i32, i32, i32
  }
  func.func @transform_5(%arg0: i32, %arg1: i32) -> (i32, i32, i32) {
    %c0_i32 = arith.constant 0 : i32
    %c0_i32_0 = arith.constant 0 : i32
    %c0_i32_1 = arith.constant 0 : i32
    %c0_i32_2 = arith.constant 0 : i32
    return %c0_i32, %c0_i32_0, %c0_i32_1 : i32, i32, i32
  }
  func.func @transform_6(%arg0: i32, %arg1: i32) -> (i32, i32) {
    %c0_i32 = arith.constant 0 : i32
    %c0_i32_0 = arith.constant 0 : i32
    return %arg0, %c0_i32 : i32, i32
  }
}

</mosaic_0001>

<bundles_post_ra>
// kernel: mul.0
= control target key start
LH: loop header
LB: loop body
LE: loop exit
PB: predicated region body
PF: predicated region fallthrough
CT: control target
= control target key end

     0   :  { %s56_s0 = inlined_call_operand.vmem [shape: f32[2,1,8], index: 0, kind: input, shape index: {}]   ;;  %s57_s1 = inlined_call_operand.vmem [shape: f32[2,1,8], index: 1, kind: input, shape index: {}]   ;;  %s58_s2 = inlined_call_operand.vmem [shape: f32[2,1,8], index: 2, kind: output, shape index: {}]  }
   0x1   :  { %v3_v0 = vld [vmem:[%s56_s0] sm:$0x1]  ;;  %v20_v2 = vld [vmem:[%s56_s0 + $0x1] sm:$0x1] }
   0x2   :  { %v4_v1 = vld [vmem:[%s57_s1] sm:$0x1]  ;;  %v21_v4 = vld [vmem:[%s57_s1 + $0x1] sm:$0x1] }
   0x3   :  { %v7_v3 = vmul.f32 %v4_v1, %v3_v0  ;;  %v16_v5 = vmul.f32 %v21_v4, %v20_v2 }
   0x5   :  { %9 = vst [vmem:[%s58_s2] sm:$0x1] %v7_v3  ;;  %22 = vst [vmem:[%s58_s2 + $0x1] sm:$0x1] %v16_v5 }

// kernel: emo_classifier_forward.1
= control target key start
LH: loop header
LB: loop body
LE: loop exit
PB: predicated region body
PF: predicated region fallthrough
CT: control target
= control target key end

     0   :  { %11 = vsyncpa [#allocation4], 0  ;;  %s1586_s0 = inlined_call_operand.vmem [shape: f32[16,32], index: 0, kind: input, shape index: {}]   ;;  %s1587_s1 = inlined_call_operand.vmem [shape: f32[2,1,8], index: 1, kind: input, shape index: {}]   ;;  %s1588_s2 = inlined_call_operand.vmem [shape: f32[2,32], index: 2, kind: input, shape index: {}]   ;;  %s1589_s3 = inlined_call_operand.vmem [shape: bf16[2,32,192], index: 3, kind: input, shape index: {}]   ;;  %s1590_s4 = inlined_call_operand.vmem [shape: bf16[2,64,32], index: 4, kind: input, shape index: {}]   ;;  %s1591_s5 = inlined_call_operand.vmem [shape: f32[2,8,128], index: 5, kind: input, shape index: {}]   ;;  %s1592_s6 = inlined_call_operand.hbm [shape: f32[16,32], index: 6, kind: output, shape index: {}]  }
   0x1   :  { %13 = vsyncpa [#allocation4 + $0x1], 0  ;;  %s1330_s21 = smov 0   ;;  %s1332_s22 = smov 0  }
   0x2   :  { %s1334_s23 = smov 0   ;;  %s1336_s24 = smov 0  }
   0x3   :  { %s1338_s25 = smov 0   ;;  %s1340_s26 = smov 0  }
   0x4   :  { %s1342_s27 = smov 0   ;;  %s1344_s28 = smov 0  }
   0x5 LB: > { %s967_s29 = sadd.s32 4294967295, %s1283_s28   ;;  %s968_s30 = sadd.s32 4294967294, %s1283_s28   ;;  %s1283_s28 = sphi %s1344_s28, %s19_s28   ;;  %s1279_s27 = sphi %s1342_s27, %s1603_s27   ;;  %s1275_s26 = sphi %s1340_s26, %s1602_s26   ;;  %s1271_s25 = sphi %s1338_s25, %s1601_s25   ;;  %s1267_s24 = sphi %s1336_s24, %s1600_s24   ;;  %s1263_s23 = sphi %s1334_s23, %s1599_s23   ;;  %s1259_s22 = sphi %s1332_s22, %s1598_s22   ;;  %s1255_s21 = sphi %s1330_s21, %s1597_s21  }
   0x6   : > { %s28_s7 = sadd.s32 1, %s1275_s26  ;;  %s31_s8 = sadd.s32 1, %s1279_s27 }
   0x7   : > { %p29_p0 = scmp.ge.s32.totalorder %s28_s7, 2  ;;  %p184_p1 = scmp.ne.s32.totalorder %s1263_s23, %s1259_s22 }
   0x8   : > { %p185_p2 = scmp.eq.s32.totalorder %s967_s29, 3  ;;  %p190_p4 = scmp.ne.s32.totalorder %s1259_s22, %s1255_s21 }
   0x9   : > { %s1605_s7 = smov (%p29_p0, %s28_s7), 0  ;;  %s1607_s8 = smov (!%p29_p0, %s31_s8), %s1279_s27 }
   0xa   : > { %p1379_p3 = por %p185_p2, %p184_p1  ;;  %p33_p5 = scmp.ge.s32.totalorder %s1607_s8, 2 }
   0xb   : > { %p191_p6 = scmp.eq.s32.totalorder %s968_s30, 3  ;;  %p971_p7 = scmp.ge.s32.totalorder %s1283_s28, 1 }
   0xc   : > { %p234_p8 = scmp.lt.s32.totalorder %s1283_s28, 5  ;;  %s1609_s8 = smov (%p33_p5, %s1607_s8), 0 }
   0xd   : > { %p1389_p9 = por %p191_p6, %p190_p4  ;;  %s171_s11 = ssub.s32 %s1279_s27, %s1609_s8 }
   0xe   : > { %p235_p10 = pnand %p971_p7, %p234_p8  ;;  %s174_s12 = sadd.s32 1, %s1263_s23 }
   0xf   : > { %p172_p11 = scmp.eq.s32.totalorder %s171_s11, 0  ;;  %s1593_s14 = sand.u32 (!%p235_p10), 1, %s1259_s22  }
  0x10   : > { %238 = sbr.rel (%p235_p10) target bundleno = 2752 (0xac0), region = 44  ;;  %p266_p12 = scmp.lt.s32.totalorder (!%p235_p10), %s1271_s25, 1 }
  0x11   : > { %s1397_s13 = scalar_select %p172_p11, %s1263_s23, %s174_s12  }
  0x12   : > { %s972_s15 = sshll.u32 (!%p235_p10), %s1593_s14, 3  ;;  %p974_p13 = scmp.ne.s32.totalorder (!%p235_p10), %s1267_s24, 0 }
  0x13   : > { %s1414_s12 = scalar_lea.vmem (!%p235_p10), [#allocation3], %s972_s15 }
  0x15   : > { %s1404_s16 = scalar_select %p266_p12, %s1271_s25, 1 }
  0x16   : > { %277 = sbr.rel (%p974_p13) target bundleno = 337 (0x151), region = 48 }
  0x17   : > { %s973_s17 = sshll.u32 %s1404_s16, 3  ;;  %s272_s20 = scalar_lea.vmem %s1587_s1, %s1404_s16 }
  0x18   : > { %s269_s11 = scalar_lea.vmem %s1586_s0, %s973_s17 }
  0x1b   : > { %v278_v0 = vld [vmem:[%s269_s11] sm:$0xff]  ;;  %vm281_vm0 = vcmask 261120  }
  0x1c   : > { %v282_v1 = vsel %vm281_vm0, %v278_v0, 0.0  ;;  %v975_v11 = vld [vmem:[%s1588_s2] ss:$0 sm:$0xff]  ;;  %v976_v13 = vld [vmem:[%s1588_s2 + $0x1] ss:$0 sm:$0xff] }
  0x1d   : > { %283 = vadd.xlane.f32.xlu0 %v282_v1 }
  0xa6   : > { %v284_v2 = vpop.xlane.xlu0 %283 }
  0xa7   : > { %v286_v3 = vmul.f32 0.03125, %v284_v2 }
  0xa9   : > { %v287_v4 = vsub.f32 %v278_v0, %v286_v3 }
  0xab   : > { %v288_v5 = vmul.f32 %v287_v4, %v287_v4 }
  0xad   : > { %v289_v6 = vsel %vm281_vm0, %v288_v5, 0.0 }
  0xae   : > { %290 = vadd.xlane.f32.xlu0 %v289_v6 }
 0x137   : > { %v291_v7 = vpop.xlane.xlu0 %290 }
 0x138   : > { %v292_v8 = vmul.f32 0.03125, %v291_v7 }
 0x13a   : > { %v293_v9 = vadd.f32 1e-12, %v292_v8 }
 0x13c   : > { %1165 = vrsqrt.f32 %v293_v9 }
 0x149   : > { %v1166_v10 = vpop.eup %1165 }
 0x14a   : > { %v295_v12 = vmul.f32 %v1166_v10, %v287_v4 }
 0x14c   : > { %v300_v14 = vmul.f32 %v975_v11, %v295_v12 }
 0x14e   : > { %v305_v15 = vadd.f32 %v976_v13, %v300_v14 }
 0x150   : > { %306 = vst.msk [vmem:[%s1414_s12] sm:$0xff] %vm281_vm0, %v305_v15 }
 0x151 PF: > { %s1001_s29 = sshll.u32 %s1267_s24, 5  ;;  %v1285_v16 = vmov 0.0   ;;  %vm1286_vm1 = vmmov 0   ;;  %vm344_vm2 = vcmask 261120   ;;  %v328_v21 = vlaneseq  ;;  %s1287_s18 = smov 80  }
 0x152   : > { %1025 = vmatprep.subr.bf16.mxu0 %v1285_v16  ;;  %s1432_s15 = scalar_lea.vmem %s1589_s3, %s1001_s29  ;;  %1029 = vmatprep.mubr.msk.bf16.mxu0 %vm1286_vm1, %v1285_v16  ;;  %s1445_s19 = scalar_lea.vmem %s1590_s4, %s1001_s29  ;;  %vm399_vm3 = vcmask 130048   ;;  %v983_v37 = vld [vmem:[%s272_s20] ss:$0 sm:$0xff]  ;;  %vm446_vm4 = vcmask 64512   ;;  %vm464_vm5 = vcmask 1043456   ;;  %vm623_vm6 = vcmask 261248  }
 0x153   : > { %v1437_v17 = vld [vmem:[%s1432_s15 + $0x10] ss:$8 sps:$4 sm:$0xff]   ;;  %1033 = vmatprep.subr.bf16.mxu1 %v1285_v16  ;;  %1035 = vmatprep.mubr.msk.bf16.mxu1 %vm1286_vm1, %v1285_v16  ;;  %v1449_v18 = vld [vmem:[%s1432_s15] ss:$8 sps:$4 sm:$0xff]   ;;  %s977_s29 = sshll.u32 %s1267_s24, 3  ;;  %v1463_v22 = vshrl.u32 %v328_v21, 7 }
 0x154   : > { %1026 = vmatpush3.bf16.msra.mxu0 %v1437_v17  ;;  %s325_s17 = scalar_lea.vmem %s1591_s5, %s977_s29  ;;  %s1288_s24 = smov 112   ;;  %v1169_v7 = vld [vmem:[%s1432_s15 + $0x14] ss:$8 sps:$4 sm:$0xff]   ;;  %v1172_v9 = vld [vmem:[%s1432_s15 + $0x4] ss:$8 sps:$4 sm:$0xff]   ;;  %vm799_vm7 = vcmask 523264  }
 0x155   : > { %1027 = vmatprep.subr.bf16.mxu0 %v1285_v16  ;;  %v330_v23 = vsub.s32 0, %v1463_v22  ;;  %v1469_v24 = vld [vmem:[%s325_s17] sm:$0xff]  ;;  %s1289_s14 = smov 64   ;;  %s1290_s16 = smov 96  }
 0x156   : > { %s1291_s20 = smov 48   ;;  %s1292_s30 = smov 32  }
 0x157   : > { %v1452_v19 = vld [vmem:[%s1414_s12] sm:$0xff]  ;;  %v331_v25 = vrot.slane %v1469_v24, %v330_v23  ;;  %s1293_s15 = smov 16   ;;  %s882_s11 = sshll.u32 %s1414_s12, 4  ;;  %s883_s11 = int_to_ptr.vmem [resolvable:$true] %s882_s11 }
 0x158   : > { %v327_v20 = vpack.c.bf16 %v1452_v19, %v1452_v19  ;;  %1028 = vmatpush3.bf16.msra.mxu0 %v1449_v18 }
 0x159   : > { %1039 = vmatprep.subr.bf16.mxu0 %v1285_v16 }
 0x15b   : > { %1030 = vmatmul.mubr.msk.bf16.vlgmr.msra.gmra.mxu0 %vm344_vm2, %v327_v20 }
 0x15c   : > { %1041 = vmatprep.mubr.msk.bf16.mxu0 %vm1286_vm1, %v1285_v16 }
 0x21b   : > { %v382_v26 = vpop.f32.mrf.mxu0 }
 0x21c   : > { %v383_v27 = vadd.f32 %v382_v26, %v331_v25 }
 0x21d   : > { %v1031_v28 = vpop.f32.mrf.mxu0 }
 0x21e   : > { %v389_v29 = vpack.c.bf16 %v383_v27, %v383_v27  ;;  %v629_v28 = vsub.s32 1, %v1463_v22 }
 0x21f   : > { %v385_v30 = vpop.f32.mrf.mxu0 }
 0x220   : > { %509 = vrot.lane.b32.xlu1 %v389_v29, %s1287_s18  ;;  %397 = vrot.lane.b32.xlu0 %v389_v29, %s1288_s24 }
 0x221   : > { %v1032_v31 = vpop.f32.mrf.mxu0 }
 0x224   : > { %511 = vrot.lane.b32.xlu0 %v389_v29, %s1289_s14  ;;  %s1596_s14 = sand.u32 1, %s1259_s22  }
 0x225   : > { %s869_s29 = scalar_lea.sflag [#allocation4], %s1596_s14 }
 0x292   : > { %v398_v32 = vpop.permute.xlu0 %397  ;;  %v510_v36 = vpop.permute.xlu1 %509 }
 0x293   : > { %v404_v33 = vsel %vm399_vm3, %v398_v32, 0 }
 0x294   : > { %1034 = vmatpush3.bf16.xpose.msra.mxu1 %v404_v33 }
 0x295   : > { %1045 = vmatprep.subr.bf16.mxu1 %v1285_v16 }
 0x296   : > { %v512_v34 = vpop.permute.xlu0 %511 }
 0x297   : > { %v517_v35 = vsel %vm399_vm3, %v512_v34, 0 }
 0x29b   : > { %1036 = vmatmul.mubr.msk.bf16.vlgmr.msra.gmra.mxu1 %vm399_vm3, %v389_v29 }
 0x29c   : > { %1046 = vmatpush3.bf16.xpose.msra.mxu1 %v517_v35  ;;  %1047 = vmatprep.mubr.msk.bf16.mxu1 %vm1286_vm1, %v1285_v16 }
 0x29d   : > { %1057 = vmatprep.subr.bf16.mxu1 %v1285_v16 }
 0x2a3   : > { %1048 = vmatmul.mubr.msk.bf16.vlgmr.msra.gmra.mxu1 %vm399_vm3, %v510_v36 }
 0x2a4   : > { %1061 = vmatprep.mubr.msk.bf16.mxu1 %vm1286_vm1, %v1285_v16 }
 0x35b   : > { %v440_v38 = vpop.f32.mrf.mxu1 }
 0x35c   : > { %v441_v39 = vadd.f32 %v983_v37, %v440_v38 }
 0x35d   : > { %v1037_v40 = vpop.f32.mrf.mxu1 }
 0x35e   : > { %v447_v41 = vsel %vm446_vm4, %v441_v39, -inf }
 0x35f   : > { %448 = vmax.xlane.f32.xlu1 %v447_v41  ;;  %v443_v42 = vpop.f32.mrf.mxu1 }
 0x361   : > { %v1038_v43 = vpop.f32.mrf.mxu1 }
 0x363   : > { %v553_v44 = vpop.f32.mrf.mxu1 }
 0x364   : > { %v554_v45 = vadd.f32 %v983_v37, %v553_v44  ;;  %v702_v44 = vsub.s32 5, %v1463_v22 }
 0x365   : > { %v1049_v46 = vpop.f32.mrf.mxu1 }
 0x366   : > { %v559_v47 = vsel %vm446_vm4, %v554_v45, -inf }
 0x367   : > { %560 = vmax.xlane.f32.xlu0 %v559_v47  ;;  %v556_v48 = vpop.f32.mrf.mxu1 }
 0x368   : > { %v703_v48 = vrot.slane %v1469_v24, %v702_v44 }
 0x369   : > { %v1050_v49 = vpop.f32.mrf.mxu1 }
 0x3e8   : > { %v449_v50 = vpop.xlane.xlu1 %448 }
 0x3e9   : > { %v450_v51 = vsub.f32 %v441_v39, %v449_v50 }
 0x3eb   : > { %v451_v52 = vmul.f32 1.442695, %v450_v51 }
 0x3ed   : > { %1177 = vpow2.f32 %v451_v52  ;;  %v1173_v52 = vld [vmem:[%s1445_s19 + $0x18] sm:$0xff]  }
 0x3f0   : > { %v561_v53 = vpop.xlane.xlu0 %560 }
 0x3f1   : > { %v562_v54 = vsub.f32 %v554_v45, %v561_v53  ;;  %v1174_v53 = vld [vmem:[%s1445_s19 + $0x10] sm:$0xff]  }
 0x3f3   : > { %v563_v55 = vmul.f32 1.442695, %v562_v54  ;;  %v1175_v54 = vld [vmem:[%s1445_s19 + $0x8] sm:$0xff]  }
 0x3f5   : > { %1179 = vpow2.f32 %v563_v55  ;;  %v1176_v55 = vld [vmem:[%s1445_s19] sm:$0xff]   ;;  %s998_s19 = sshll.u32 %s1271_s25, 7 }
 0x3f6   : > { %s880_s24 = scalar_lea.hbm %s1592_s6, %s998_s19 }
 0x3fa   : > { %v1178_v56 = vpop.eup %1177 }
 0x3fb   : > { %v453_v57 = vsel %vm446_vm4, %v1178_v56, 0.0 }
 0x3fc   : > { %454 = vadd.xlane.f32.xlu0 %v453_v57 }
 0x402   : > { %v1180_v58 = vpop.eup %1179 }
 0x403   : > { %v565_v59 = vsel %vm446_vm4, %v1180_v58, 0.0 }
 0x404   : > { %566 = vadd.xlane.f32.xlu1 %v565_v59 }
 0x412   : > { %459 = vrot.lane.b32.xlu0 %v389_v29, %s1290_s16  ;;  %s1191_s16 = scalar_lea.vmem %s883_s11, 128 }
 0x413   : > { %p1192_p0 = scmp.ne.s32.totalorder %s883_s11, %s1191_s16 }
 0x415   : > { %571 = vrot.lane.b32.xlu1 %v389_v29, %s1291_s20  ;;  %v630_v29 = vrot.slane %v1469_v24, %v629_v28  ;;  %p1193_p1 = pnand %p1192_p0, %p1379_p3  ;;  %s1294_s20 = smov [#allocation3]  }
 0x416   : > { %633 = vrot.lane.b32.xlu0 %v1437_v17, %s1292_s30 }
 0x417   : > { %p1194_p2 = pneg %p1193_p1 }
 0x485   : > { %v455_v60 = vpop.xlane.xlu0 %454 }
 0x486   : > { %1181 = vrcp.f32 %v455_v60 }
 0x489   : > { %v460_v61 = vpop.permute.xlu0 %459 }
 0x48a   : > { %v466_v62 = vsel %vm464_vm5, %v460_v61, 0 }
 0x48b   : > { %1040 = vmatpush3.bf16.msra.mxu0 %v466_v62 }
 0x48c   : > { %1051 = vmatprep.subr.bf16.mxu0 %v1285_v16 }
 0x48d   : > { %v567_v63 = vpop.xlane.xlu1 %566  ;;  %v634_v10 = vpop.permute.xlu0 %633 }
 0x48e   : > { %1183 = vrcp.f32 %v567_v63  ;;  %1058 = vmatpush3.bf16.msra.mxu1 %v634_v10 }
 0x48f   : > { %1059 = vmatprep.subr.bf16.mxu1 %v1285_v16 }
 0x491   : > { %v572_v2 = vpop.permute.xlu1 %571 }
 0x492   : > { %v577_v4 = vsel %vm464_vm5, %v572_v2, 0 }
 0x493   : > { %v1182_v0 = vpop.eup %1181 }
 0x494   : > { %v457_v1 = vmul.f32 %v1182_v0, %v1178_v56  ;;  %v708_v56 = vsub.s32 2, %v1463_v22 }
 0x496   : > { %v458_v3 = vpack.c.bf16 %v457_v1, %v457_v1  ;;  %v709_v57 = vrot.slane %v1469_v24, %v708_v56 }
 0x498   : > { %1042 = vmatmul.mubr.msk.bf16.vlgmr.msra.gmra.mxu0 %vm446_vm4, %v458_v3 }
 0x499   : > { %1052 = vmatpush3.bf16.msra.mxu0 %v577_v4  ;;  %1053 = vmatprep.mubr.msk.bf16.mxu0 %vm1286_vm1, %v1285_v16 }
 0x49a   : > { %1065 = vmatprep.subr.bf16.mxu0 %v1285_v16 }
 0x49b   : > { %v1184_v5 = vpop.eup %1183 }
 0x49c   : > { %v569_v6 = vmul.f32 %v1184_v5, %v1180_v58 }
 0x49e   : > { %v570_v8 = vpack.c.bf16 %v569_v6, %v569_v6 }
 0x4a0   : > { %1054 = vmatmul.mubr.msk.bf16.vlgmr.msra.gmra.mxu0 %vm446_vm4, %v570_v8  ;;  %v773_v8 = vsub.s32 3, %v1463_v22 }
 0x4a1   : > { %1066 = vmatpush3.bf16.msra.mxu0 %v1169_v7  ;;  %1069 = vmatprep.mubr.msk.bf16.mxu0 %vm1286_vm1, %v1285_v16 }
 0x4a2   : > { %1067 = vmatprep.subr.bf16.mxu0 %v1285_v16 }
 0x4a5   : > { %1068 = vmatpush3.bf16.msra.mxu0 %v1172_v9  ;;  %v774_v9 = vrot.slane %v1469_v24, %v773_v8 }
 0x558   : > { %v502_v11 = vpop.f32.mrf.mxu0 }
 0x559   : > { %508 = vst.msk [vmem:[#allocation2] sm:$0xff] %vm399_vm3, %v502_v11 }
 0x55a   : > { %v1043_v12 = vpop.f32.mrf.mxu0 }
 0x55c   : > { %v505_v13 = vpop.f32.mrf.mxu0 }
 0x55e   : > { %v1044_v14 = vpop.f32.mrf.mxu0 }
 0x560   : > { %v613_v15 = vpop.f32.mrf.mxu0 }
 0x561   : > { %620 = vrot.lane.b32.xlu1 %v613_v15, %s1293_s15 }
 0x562   : > { %v1055_v20 = vpop.f32.mrf.mxu0 }
 0x564   : > { %v616_v21 = vpop.f32.mrf.mxu0 }
 0x565   : > { %631 = vrot.lane.b32.xlu1 %v1449_v18, %s1292_s30  ;;  %s1195_s30 = sshll.u32 %s1294_s20, 4  ;;  %s1196_s30 = int_to_ptr.vmem [resolvable:$false] %s1195_s30 }
 0x566   : > { %v1056_v23 = vpop.f32.mrf.mxu0  ;;  %s1197_s25 = scalar_lea.vmem %s1196_s30, 256  ;;  %p1198_p4 = scmp.lt.s32.totalorder %s883_s11, %s1196_s30 }
 0x567   : > { %p1199_p5 = scmp.lt.s32.totalorder %s1197_s25, %s1191_s16 }
 0x569   : > { %p1200_p6 = por %p1199_p5, %p1198_p4 }
 0x56b   : > { %p1201_p7 = pnand %p1200_p6, %p1194_p2 }
 0x5d3   : > { %v621_v17 = vpop.permute.xlu1 %620 }
 0x5d4   : > { %624 = vst.msk [vmem:[#allocation2] sm:$0xff] %vm623_vm6, %v621_v17 }
 0x5d7   : > { %v632_v25 = vpop.permute.xlu1 %631 }
 0x5d8   : > { %1060 = vmatpush3.bf16.msra.mxu1 %v632_v25 }
 0x5d9   : > { %1073 = vmatprep.subr.bf16.mxu1 %v1285_v16 }
 0x5db   : > { %v625_v26 = vld [vmem:[#allocation2] sm:$0xff] }
 0x5dc   : > { %v626_v27 = vpack.c.bf16 %v625_v26, %v625_v26 }
 0x5de   : > { %1062 = vmatmul.mubr.msk.bf16.vlgmr.msra.gmra.mxu1 %vm344_vm2, %v626_v27 }
 0x5df   : > { %1081 = vmatprep.mubr.msk.bf16.mxu1 %vm1286_vm1, %v1285_v16  ;;  %1074 = vmatpush3.bf16.msra.mxu1 %v1173_v52 }
 0x5e0   : > { %1075 = vmatprep.subr.bf16.mxu1 %v1285_v16 }
 0x5e3   : > { %1076 = vmatpush3.bf16.msra.mxu1 %v1174_v53 }
 0x5e4   : > { %1077 = vmatprep.subr.bf16.mxu1 %v1285_v16 }
 0x5e7   : > { %1078 = vmatpush3.bf16.msra.mxu1 %v1175_v54 }
 0x5e8   : > { %1079 = vmatprep.subr.bf16.mxu1 %v1285_v16 }
 0x5eb   : > { %1080 = vmatpush3.bf16.msra.mxu1 %v1176_v55 }
 0x69e   : > { %v674_v18 = vpop.f32.mrf.mxu1 }
 0x69f   : > { %v675_v30 = vadd.f32 %v674_v18, %v630_v29  ;;  %v859_v18 = vsub.s32 6, %v1463_v22 }
 0x6a0   : > { %v1063_v31 = vpop.f32.mrf.mxu1 }
 0x6a1   : > { %v680_v32 = vadd.f32 %v675_v30, %v1452_v19  ;;  %v697_v19 = vsub.s32 4, %v1463_v22  ;;  %v864_v30 = vsub.s32 7, %v1463_v22  ;;  %v860_v31 = vrot.slane %v1469_v24, %v859_v18 }
 0x6a2   : > { %v677_v33 = vpop.f32.mrf.mxu1 }
 0x6a3   : > { %v681_v34 = vsel %vm344_vm2, %v680_v32, 0.0  ;;  %v698_v45 = vrot.slane %v1469_v24, %v697_v19 }
 0x6a4   : > { %682 = vadd.xlane.f32.xlu0 %v681_v34  ;;  %v1064_v35 = vpop.f32.mrf.mxu1  ;;  %v865_v34 = vrot.slane %v1469_v24, %v864_v30 }
 0x72d   : > { %v683_v36 = vpop.xlane.xlu0 %682 }
 0x72e   : > { %v685_v37 = vmul.f32 0.03125, %v683_v36 }
 0x730   : > { %v686_v38 = vsub.f32 %v680_v32, %v685_v37 }
 0x732   : > { %v687_v39 = vmul.f32 %v686_v38, %v686_v38 }
 0x734   : > { %v688_v40 = vsel %vm344_vm2, %v687_v39, 0.0 }
 0x735   : > { %689 = vadd.xlane.f32.xlu1 %v688_v40 }
 0x7be   : > { %v690_v41 = vpop.xlane.xlu1 %689 }
 0x7bf   : > { %v691_v42 = vmul.f32 0.03125, %v690_v41 }
 0x7c1   : > { %v692_v43 = vadd.f32 1e-12, %v691_v42 }
 0x7c3   : > { %1185 = vrsqrt.f32 %v692_v43 }
 0x7d0   : > { %v1186_v46 = vpop.eup %1185 }
 0x7d1   : > { %v694_v47 = vmul.f32 %v1186_v46, %v686_v38 }
 0x7d3   : > { %v699_v49 = vmul.f32 %v698_v45, %v694_v47 }
 0x7d5   : > { %v704_v50 = vadd.f32 %v703_v48, %v699_v49 }
 0x7d7   : > { %v705_v51 = vpack.c.bf16 %v704_v50, %v704_v50 }
 0x7d9   : > { %1070 = vmatmul.mubr.msk.bf16.vlgmr.msra.gmra.mxu0 %vm344_vm2, %v705_v51 }
 0x899   : > { %v755_v58 = vpop.f32.mrf.mxu0 }
 0x89a   : > { %v756_v59 = vadd.f32 %v755_v58, %v709_v57 }
 0x89b   : > { %v1071_v60 = vpop.f32.mrf.mxu0 }
 0x89c   : > { %v762_v61 = vmul.f32 0.044715, %v756_v59  ;;  %v761_v5 = vmul.f32 0.5, %v756_v59 }
 0x89d   : > { %v758_v62 = vpop.f32.mrf.mxu0 }
 0x89e   : > { %v763_v63 = vmul.f32 %v762_v61, %v756_v59 }
 0x89f   : > { %v1072_v0 = vpop.f32.mrf.mxu0 }
 0x8a0   : > { %v764_v1 = vmul.f32 %v763_v63, %v756_v59 }
 0x8a2   : > { %v765_v2 = vadd.f32 %v764_v1, %v756_v59 }
 0x8a4   : > { %v766_v3 = vmul.f32 0.7978846, %v765_v2 }
 0x8a6   : > { %1187 = vtanh.f32 %v766_v3 }
 0x8b3   : > { %v1188_v4 = vpop.eup %1187 }
 0x8b4   : > { %v768_v6 = vadd.f32 1.0, %v1188_v4 }
 0x8b6   : > { %v769_v16 = vmul.f32 %v768_v6, %v761_v5 }
 0x8b8   : > { %v770_v7 = vpack.c.bf16 %v769_v16, %v769_v16 }
 0x8ba   : > { %1082 = vmatmul.mubr.msk.bf16.vlgmr.msra.gmra.mxu1 %vm799_vm7, %v770_v7 }
 0x97a   : > { %v837_v10 = vpop.f32.mrf.mxu1 }
 0x97b   : > { %v838_v11 = vadd.f32 %v837_v10, %v774_v9 }
 0x97c   : > { %v1083_v12 = vpop.f32.mrf.mxu1 }
 0x97d   : > { %v843_v13 = vadd.f32 %v838_v11, %v704_v50 }
 0x97e   : > { %v840_v14 = vpop.f32.mrf.mxu1 }
 0x97f   : > { %v844_v15 = vsel %vm344_vm2, %v843_v13, 0.0 }
 0x980   : > { %845 = vadd.xlane.f32.xlu0 %v844_v15  ;;  %v1084_v20 = vpop.f32.mrf.mxu1 }
 0xa09   : > { %v846_v21 = vpop.xlane.xlu0 %845 }
 0xa0a   : > { %v847_v23 = vmul.f32 0.03125, %v846_v21 }
 0xa0c   : > { %v848_v17 = vsub.f32 %v843_v13, %v847_v23 }
 0xa0e   : > { %v849_v25 = vmul.f32 %v848_v17, %v848_v17 }
 0xa10   : > { %v850_v26 = vsel %vm344_vm2, %v849_v25, 0.0 }
 0xa11   : > { %851 = vadd.xlane.f32.xlu0 %v850_v26 }
 0xa9a   : > { %v852_v27 = vpop.xlane.xlu0 %851 }
 0xa9b   : > { %v853_v28 = vmul.f32 0.03125, %v852_v27 }
 0xa9d   : > { %v854_v29 = vadd.f32 1e-12, %v853_v28 }
 0xa9f   : > { %1189 = vrsqrt.f32 %v854_v29 }
 0xaac   : > { %v1190_v32 = vpop.eup %1189 }
 0xaad   : > { %v856_v33 = vmul.f32 %v1190_v32, %v848_v17 }
 0xaaf   : > { %v861_v35 = vmul.f32 %v860_v31, %v856_v33 }
 0xab1   : > { %v866_v36 = vadd.f32 %v865_v34, %v861_v35 }
 0xab3   : > { %867 = vst.msk [vmem:[%s1414_s12] sm:$0xff] %vm344_vm2, %v866_v36 }
 0xab4   : > { %1204 = shalt.err (!%p1201_p7)
}
 0xab5   : > { %s1205_s15 = scalar_lea.hbm %s880_s24, 128  ;;  %s1209_s17 = scalar_lea.hbm %s1592_s6, 256 }
 0xab6   : > { %p1206_p8 = scmp.ne.s32.totalorder %s880_s24, %s1205_s15  ;;  %p1210_p12 = scmp.lt.s32.totalorder %s880_s24, %s1592_s6 }
 0xab7   : > { %p1211_p13 = scmp.lt.s32.totalorder %s1209_s17, %s1205_s15 }
 0xab8   : > { %p1207_p10 = pnand %p1206_p8, %p1379_p3 }
 0xab9   : > { %p1212_p0 = por %p1211_p13, %p1210_p12 }
 0xaba   : > { %p1208_p11 = pneg %p1207_p10 }
 0xabc   : > { %p1213_p1 = pnand %p1212_p0, %p1208_p11 }
 0xabe   : > { %1216 = shalt.err (!%p1213_p1)
}
 0xabf   : > { %1085 = dma.vmem_to_hbm [thread:$0]  (%p1379_p3), %s883_s11, 128, %s880_s24, %s869_s29  }
 0xac0 PF: > { %p1091_p2 = scmp.ge.s32.totalorder %s1283_s28, 2  ;;  %s894_s16 = sand.u32 1, %s1255_s21  }
 0xac1   : > { %s895_s20 = scalar_lea.sflag [#allocation4], %s894_s16 }
 0xac2   : > { %p1088_p4 = pnand %p1091_p2, %p1389_p9 }
 0xac4   : > { %p1089_p5 = pneg %p1088_p4 }
 0xac6   : > { %1250 = dma.done.wait (%p1089_p5), %s895_s20, 128  }
 0xac7   : > { %1252 = vsyncadd (%p1089_p5), %s895_s20, 4294967168  ;;  %s19_s28 = sadd.s32 1, %s1283_s28   ;;  %s1597_s21 = smov %s1259_s22 }
 0xac8   : > { %p16_p6 = scmp.ge.s32.totalorder %s19_s28, 6   ;;  %s1598_s22 = smov %s1263_s23 }
 0xac9   : > { %s1599_s23 = smov %s1397_s13  ;;  %s1600_s24 = smov %s1275_s26 }
 0xaca   : > { %s1601_s25 = smov %s1279_s27  ;;  %s1602_s26 = smov %s1605_s7 }
 0xacb   : > { %s1603_s27 = smov %s1609_s8  ;;  %18 = sbr.rel (!%p16_p6) target bundleno = 5 (0x5), region = 89 }
 0xad0   :  { %900 = vsyncpa [#allocation4], 1 }
 0xad1   :  { %902 = vsyncpa [#allocation4 + $0x1], 1 }

</bundles_post_ra>
